<compile_context>
chip_gen: v6e
topology: v6e:2x2x1
jax: 0.10.0
libtpu: 0.0.40
codegen_flags: <defaults>
</compile_context>

<pallas_src>
import functools

import jax
import jax.numpy as jnp
from jax.experimental import pallas as pl
from jax.experimental.pallas import tpu as pltpu

MARGIN_PUSH = 5.0
MARGIN_PULL = 1.0
PAIRWISE_EPS = 1e-6  # F.pairwise_distance adds eps to the elementwise difference


def _hinge_m_loss_kernel(o1_ref, o2_ref, lab_ref, out_ref, *, batch_size):
    i = pl.program_id(0)
    tb = o1_ref.shape[0]

    @pl.when(i == 0)
    def _init():
        out_ref[0] = 0.0

    # Upcast in-kernel (inputs may be bf16 in HBM); all arithmetic in f32.
    o1 = o1_ref[...].astype(jnp.float32)                      # (TB, D)
    o2 = o2_ref[...].astype(jnp.float32)                      # (TB, D)
    lab = lab_ref[...].astype(jnp.float32)                    # (TB, 1)

    diff = o1 - o2 + PAIRWISE_EPS                             # (TB, D)
    sq_dist = jnp.sum(diff * diff, axis=-1, keepdims=True)    # (TB, 1)  XLU reduce
    dist = jnp.sqrt(sq_dist)                                  # (TB, 1)

    pull = jnp.maximum(dist - MARGIN_PULL, 0.0)
    push = jnp.maximum(MARGIN_PUSH - dist, 0.0)
    per_row = (1.0 - lab) * pull * pull + lab * push * push   # (TB, 1)

    # Mask rows that lie past the end of the batch (partial last tile).
    row = jax.lax.broadcasted_iota(jnp.int32, (tb, 1), 0) + i * tb
    per_row = jnp.where(row < batch_size, per_row, 0.0)

    out_ref[0] += jnp.sum(per_row)

    @pl.when(i == pl.num_programs(0) - 1)
    def _finalize():
        out_ref[0] = out_ref[0] / batch_size


def _choose_tile_rows(batch, feat, itemsize):
    # ~2 MiB per input buffer; 2 inputs x 2 pipeline buffers ≈ 8 MiB total,
    # safe under every generation's scoped-VMEM default.
    per_buffer_bytes = 2 * 1024 * 1024
    rows = per_buffer_bytes // max(feat * itemsize, 1)
    rows = max(8, min(int(rows), 2048))   # >=8 sublanes, amortize ~0.35us/step
    rows = (rows // 8) * 8                # sublane-aligned block
    if batch <= rows:
        return batch                      # single tile == full array dims
    return rows


def hinge_m_loss(output1, output2, label, *, tile_rows=None):
    """output1, output2: (B, D) float/bf16; label: (B,). Returns scalar f32."""
    B, D = output1.shape
    if tile_rows is None:
        tile_rows = _choose_tile_rows(B, D, jnp.dtype(output1.dtype).itemsize)
    num_tiles = pl.cdiv(B, tile_rows)
    label2d = label.reshape(B, 1)

    kernel = functools.partial(_hinge_m_loss_kernel, batch_size=B)
    out = pl.pallas_call(
        kernel,
        out_shape=jax.ShapeDtypeStruct((1,), jnp.float32),
        grid=(num_tiles,),
        in_specs=[
            pl.BlockSpec((tile_rows, D), lambda i: (i, 0)),
            pl.BlockSpec((tile_rows, D), lambda i: (i, 0)),
            pl.BlockSpec((tile_rows, 1), lambda i: (i, 0)),
        ],
        # Scalar output resident in SMEM across all grid steps (accumulator).
        out_specs=pl.BlockSpec((1,), lambda i: (0,), memory_space=pltpu.SMEM),
        compiler_params=pltpu.CompilerParams(
            # Output accumulates across the batch-tile axis -> must be "arbitrary".
            dimension_semantics=("arbitrary",),
            vmem_limit_bytes=32 * 1024 * 1024,
        ),
    )(output1, output2, label2d)
    return out[0]


def _reference(output1, output2, label):
    # Pure-JAX reference mirroring the PyTorch forward (for sanity check).
    o1 = output1.astype(jnp.float32)
    o2 = output2.astype(jnp.float32)
    d = jnp.sqrt(jnp.sum((o1 - o2 + PAIRWISE_EPS) ** 2, axis=-1))
    pull = jnp.clip(d - MARGIN_PULL, 0.0) ** 2
    push = jnp.clip(MARGIN_PUSH - d, 0.0) ** 2
    return jnp.mean((1.0 - label.astype(jnp.float32)) * pull
                    + label.astype(jnp.float32) * push)


if __name__ == "__main__":
    key = jax.random.PRNGKey(0)
    k1, k2, k3 = jax.random.split(key, 3)

    # Primary small shape consistent with the module (single-tile path).
    B, D = 8, 32
    output1 = jax.random.normal(k1, (B, D), dtype=jnp.float32)
    output2 = jax.random.normal(k2, (B, D), dtype=jnp.float32)
    label = jax.random.bernoulli(k3, 0.5, (B,)).astype(jnp.float32)

    loss = hinge_m_loss(output1, output2, label)
    jax.block_until_ready(loss)
    ref = _reference(output1, output2, label)
    assert jnp.allclose(loss, ref, rtol=1e-5, atol=1e-5), (loss, ref)

    # Multi-tile + partial-last-tile path (B not a multiple of the tile size).
    B2, D2 = 20, 32
    k4, k5, k6 = jax.random.split(jax.random.PRNGKey(1), 3)
    o1b = jax.random.normal(k4, (B2, D2), dtype=jnp.float32)
    o2b = jax.random.normal(k5, (B2, D2), dtype=jnp.float32)
    labb = jax.random.bernoulli(k6, 0.5, (B2,)).astype(jnp.float32)
    loss2 = hinge_m_loss(o1b, o2b, labb, tile_rows=8)
    jax.block_until_ready(loss2)
    ref2 = _reference(o1b, o2b, labb)
    assert jnp.allclose(loss2, ref2, rtol=1e-5, atol=1e-5), (loss2, ref2)

    print("KERNEL_OK")
</pallas_src>

<mosaic_0001>
module attributes {stable_mosaic.version = 11 : i64} {
  func.func @_hinge_m_loss_kernel(%arg0: i32, %arg1: memref<8x32xf32, #tpu.memory_space<vmem>>, %arg2: memref<8x32xf32, #tpu.memory_space<vmem>>, %arg3: memref<8x1xf32, #tpu.memory_space<vmem>>, %arg4: memref<1xf32, #tpu.memory_space<smem>>) attributes {dimension_semantics = [#tpu.dimension_semantics<arbitrary>], iteration_bounds = array<i64: 1>, scalar_prefetch = 0 : i64, scratch_operands = 0 : i64, tpu.core_type = #tpu.core_type<tc>, window_params = [{transform_indices = @transform_0, window_bounds = array<i64: 8, 32>}, {transform_indices = @transform_1, window_bounds = array<i64: 8, 32>}, {transform_indices = @transform_2, window_bounds = array<i64: 8, 1>}, {transform_indices = @transform_3, window_bounds = array<i64: 1>}]} {
    %c0_i32 = arith.constant 0 : i32
    %0 = arith.cmpi eq, %arg0, %c0_i32 : i32
    %1 = arith.extui %0 : i1 to i32
    %c0_i32_0 = arith.constant 0 : i32
    %2 = arith.cmpi ne, %1, %c0_i32_0 : i32
    scf.if %2 {
      %cst_19 = arith.constant 0.000000e+00 : f32
      %c0_20 = arith.constant 0 : index
      %46 = memref.load %arg4[%c0_20] : memref<1xf32, #tpu.memory_space<smem>>
      memref.store %cst_19, %arg4[%c0_20] : memref<1xf32, #tpu.memory_space<smem>>
    } else {
    }
    %c0 = arith.constant 0 : index
    %c0_1 = arith.constant 0 : index
    %3 = vector.load %arg1[%c0, %c0_1] : memref<8x32xf32, #tpu.memory_space<vmem>>, vector<8x32xf32>
    %c0_2 = arith.constant 0 : index
    %c0_3 = arith.constant 0 : index
    %4 = vector.load %arg2[%c0_2, %c0_3] : memref<8x32xf32, #tpu.memory_space<vmem>>, vector<8x32xf32>
    %c0_4 = arith.constant 0 : index
    %c0_5 = arith.constant 0 : index
    %5 = vector.load %arg3[%c0_4, %c0_5] : memref<8x1xf32, #tpu.memory_space<vmem>>, vector<8x1xf32>
    %6 = arith.subf %3, %4 : vector<8x32xf32>
    %cst = arith.constant 9.99999997E-7 : f32
    %7 = vector.broadcast %cst : f32 to vector<8x32xf32>
    %8 = arith.addf %6, %7 : vector<8x32xf32>
    %9 = arith.mulf %8, %8 : vector<8x32xf32>
    %cst_6 = arith.constant dense<0.000000e+00> : vector<8xf32>
    %10 = vector.multi_reduction <add>, %9, %cst_6 [1] : vector<8x32xf32> to vector<8xf32>
    %11 = vector.shape_cast %10 : vector<8xf32> to vector<8x1xf32>
    %12 = math.sqrt %11 : vector<8x1xf32>
    %cst_7 = arith.constant 1.000000e+00 : f32
    %13 = vector.broadcast %cst_7 : f32 to vector<8x1xf32>
    %14 = arith.subf %12, %13 : vector<8x1xf32>
    %cst_8 = arith.constant 0.000000e+00 : f32
    %15 = vector.broadcast %cst_8 : f32 to vector<8x1xf32>
    %16 = arith.maximumf %14, %15 : vector<8x1xf32>
    %cst_9 = arith.constant 5.000000e+00 : f32
    %17 = vector.broadcast %cst_9 : f32 to vector<8x1xf32>
    %18 = arith.subf %17, %12 : vector<8x1xf32>
    %cst_10 = arith.constant 0.000000e+00 : f32
    %19 = vector.broadcast %cst_10 : f32 to vector<8x1xf32>
    %20 = arith.maximumf %18, %19 : vector<8x1xf32>
    %cst_11 = arith.constant 1.000000e+00 : f32
    %21 = vector.broadcast %cst_11 : f32 to vector<8x1xf32>
    %22 = arith.subf %21, %5 : vector<8x1xf32>
    %23 = arith.mulf %22, %16 : vector<8x1xf32>
    %24 = arith.mulf %23, %16 : vector<8x1xf32>
    %25 = arith.mulf %5, %20 : vector<8x1xf32>
    %26 = arith.mulf %25, %20 : vector<8x1xf32>
    %27 = arith.addf %24, %26 : vector<8x1xf32>
    %28 = tpu.iota {dimensions = array<i32: 0>} : vector<8x1xi32>
    %c8_i32 = arith.constant 8 : i32
    %29 = arith.muli %arg0, %c8_i32 : i32
    %30 = vector.broadcast %29 : i32 to vector<8x1xi32>
    %31 = arith.addi %28, %30 : vector<8x1xi32>
    %c8_i32_12 = arith.constant 8 : i32
    %32 = vector.broadcast %c8_i32_12 : i32 to vector<8x1xi32>
    %33 = arith.cmpi slt, %31, %32 : vector<8x1xi32>
    %cst_13 = arith.constant 0.000000e+00 : f32
    %34 = vector.broadcast %cst_13 : f32 to vector<8x1xf32>
    %35 = arith.select %33, %27, %34 : vector<8x1xi1>, vector<8x1xf32>
    %c0_14 = arith.constant 0 : index
    %36 = memref.load %arg4[%c0_14] : memref<1xf32, #tpu.memory_space<smem>>
    %37 = vector.shape_cast %35 : vector<8x1xf32> to vector<1x8x1xf32>
    %cst_15 = arith.constant dense<0.000000e+00> : vector<1xf32>
    %38 = vector.multi_reduction <add>, %37, %cst_15 [1, 2] : vector<1x8x1xf32> to vector<1xf32>
    %39 = vector.shape_cast %38 : vector<1xf32> to vector<1x1x1xf32>
    %40 = vector.extract %39[0, 0, 0] : f32 from vector<1x1x1xf32>
    %41 = arith.addf %36, %40 : f32
    %c0_16 = arith.constant 0 : index
    %42 = memref.load %arg4[%c0_16] : memref<1xf32, #tpu.memory_space<smem>>
    memref.store %41, %arg4[%c0_16] : memref<1xf32, #tpu.memory_space<smem>>
    %c0_i32_17 = arith.constant 0 : i32
    %43 = arith.cmpi eq, %arg0, %c0_i32_17 : i32
    %44 = arith.extui %43 : i1 to i32
    %c0_i32_18 = arith.constant 0 : i32
    %45 = arith.cmpi ne, %44, %c0_i32_18 : i32
    scf.if %45 {
      %c0_19 = arith.constant 0 : index
      %46 = memref.load %arg4[%c0_19] : memref<1xf32, #tpu.memory_space<smem>>
      %cst_20 = arith.constant 8.000000e+00 : f32
      %47 = arith.divf %46, %cst_20 : f32
      %c0_21 = arith.constant 0 : index
      %48 = memref.load %arg4[%c0_21] : memref<1xf32, #tpu.memory_space<smem>>
      memref.store %47, %arg4[%c0_21] : memref<1xf32, #tpu.memory_space<smem>>
    } else {
    }
    return
  }
  func.func @transform_0(%arg0: i32) -> (i32, i32) {
    %c0_i32 = arith.constant 0 : i32
    %c0_i32_0 = arith.constant 0 : i32
    return %arg0, %c0_i32 : i32, i32
  }
  func.func @transform_1(%arg0: i32) -> (i32, i32) {
    %c0_i32 = arith.constant 0 : i32
    %c0_i32_0 = arith.constant 0 : i32
    return %arg0, %c0_i32 : i32, i32
  }
  func.func @transform_2(%arg0: i32) -> (i32, i32) {
    %c0_i32 = arith.constant 0 : i32
    %c0_i32_0 = arith.constant 0 : i32
    return %arg0, %c0_i32 : i32, i32
  }
  func.func @transform_3(%arg0: i32) -> i32 {
    %c0_i32 = arith.constant 0 : i32
    %c0_i32_0 = arith.constant 0 : i32
    return %c0_i32 : i32
  }
}

</mosaic_0001>

<bundles_post_ra>
// kernel: tpu_custom_call.1
= control target key start
LH: loop header
LB: loop body
LE: loop exit
PB: predicated region body
PF: predicated region fallthrough
CT: control target
= control target key end

     0   :  { %8 = vsyncpa [#allocation3], 0  ;;  %s178_s0 = inlined_call_operand.vmem [shape: f32[8,32], index: 0, kind: input, shape index: {}]   ;;  %s179_s1 = inlined_call_operand.hbm [shape: f32[8,32], index: 1, kind: input, shape index: {}]   ;;  %s180_s2 = inlined_call_operand.vmem [shape: f32[8,1], index: 2, kind: input, shape index: {}]   ;;  %s181_s3 = inlined_call_operand.hbm [shape: f32[1], index: 3, kind: output, shape index: {}]  }
   0x1   :  { %9 = vsyncpa [#allocation4], 0  ;;  %s144_s12 = smov [#allocation2]  }
   0x2   :  { %s18_s13 = sshll.u32 %s144_s12, 4  ;;  %s19_s13 = int_to_ptr.vmem [resolvable:$true] %s18_s13 }
   0x3   :  { %s120_s14 = scalar_lea.vmem %s19_s13, 128  ;;  %p125_p1 = scmp.lt.s32.totalorder %s19_s13, %s19_s13 }
   0x4   :  { %p121_p0 = scmp.ne.s32.totalorder %s19_s13, %s120_s14  ;;  %p126_p2 = scmp.lt.s32.totalorder %s120_s14, %s120_s14 }
   0x6   :  { %p127_p3 = por %p126_p2, %p125_p1 }
   0x8   :  { %p128_p4 = pnand %p127_p3, %p121_p0 }
   0xa   :  { %131 = shalt.err (!%p128_p4)
}
   0xb   :  { %21 = dma.hbm_to_vmem [thread:$0]  %s179_s1, 128, %s19_s13, [#allocation3]  }
   0xc   :  { %140 = dma.done.wait [#allocation3], 128  }
   0xd   :  { %141 = vsyncadd [#allocation3], 4294967168  ;;  %v33_v0 = vld [vmem:[%s178_s0] sm:$0xff]  ;;  %vm39_vm0 = vcmask 261120   ;;  %vm68_vm3 = vcmask 7168   ;;  %s145_s20 = smov [#allocation5]  }
   0xe   :  { %v34_v1 = vld [vmem:[#allocation2] sm:$0xff] }
   0xf   :  { %v36_v2 = vsub.f32 %v33_v0, %v34_v1  ;;  %v35_v10 = vld [vmem:[%s180_s2] sm:$0xff] }
  0x10   :  { %v54_v15 = vsub.f32 1.0, %v35_v10 }
  0x11   :  { %v37_v3 = vadd.f32 1e-06, %v36_v2 }
  0x13   :  { %v38_v4 = vmul.f32 %v37_v3, %v37_v3 }
  0x15   :  { %v40_v5 = vsel %vm39_vm0, %v38_v4, 0.0 }
  0x16   :  { %41 = vadd.xlane.f32.xlu0 %v40_v5 }
  0x9f   :  { %v42_v6 = vpop.xlane.xlu0 %41 }
  0xa0   :  { %110 = vrsqrt.f32 %v42_v6  ;;  %vm45_vm1 = vcmp.eq.f32.partialorder %v42_v6, inf  ;;  %v48_v9 = vand.u32 2147483648, %v42_v6  ;;  %vm47_vm2 = vcmp.eq.f32.partialorder %v42_v6, 0.0 }
  0xad   :  { %v111_v7 = vpop.eup %110 }
  0xae   :  { %v44_v8 = vmul.f32 %v111_v7, %v42_v6 }
  0xb0   :  { %v46_v11 = vsel %vm45_vm1, %v42_v6, %v44_v8 }
  0xb1   :  { %v49_v12 = vsel %vm47_vm2, %v48_v9, %v46_v11 }
  0xb2   :  { %v104_v13 = vadd.f32 -1.0, %v49_v12  ;;  %v52_v14 = vsub.f32 5.0, %v49_v12 }
  0xb4   :  { %v51_v16 = vmax.f32 %v104_v13, 0.0  ;;  %v53_v17 = vmax.f32 %v52_v14, 0.0 }
  0xb6   :  { %v55_v18 = vmul.f32 %v54_v15, %v51_v16  ;;  %v57_v19 = vmul.f32 %v53_v17, %v35_v10 }
  0xb8   :  { %v56_v20 = vmul.f32 %v55_v18, %v51_v16  ;;  %v58_v21 = vmul.f32 %v57_v19, %v53_v17 }
  0xba   :  { %v59_v22 = vadd.f32 %v58_v21, %v56_v20 }
  0xbc   :  { %v69_v23 = vsel %vm68_vm3, %v59_v22, 0.0 }
  0xbd   :  { %70 = vadd.xlane.f32.xlu0 %v69_v23 }
 0x146   :  { %v71_v24 = vpop.xlane.xlu0 %70 }
 0x147   :  { %v72_v25 = vrot.slane %v71_v24, 4 }
 0x149   :  { %v73_v26 = vadd.f32 %v72_v25, %v71_v24 }
 0x14b   :  { %v74_v27 = vrot.slane %v73_v26, 2 }
 0x14d   :  { %v75_v28 = vadd.f32 %v74_v27, %v73_v26 }
 0x14f   :  { %v76_v29 = vrot.slane %v75_v28, 1 }
 0x151   :  { %v77_v30 = vadd.f32 %v76_v29, %v75_v28 }
 0x153   :  { %105 = vpush %v77_v30 }
 0x184   :  { %s106_s0 = spop %105 }
 0x185   :  { %s88_s2 = smul.f32 0.125, %s106_s0 }
 0x187   :  { %89 = sst [smem:[#allocation5]] %s88_s2 }
 0x188   :  { %97 = dma.smem_to_hbm %s145_s20, 16, %s181_s3, [#allocation4]  }
 0x189   :  { %142 = dma.done.wait [#allocation4], 16  }
 0x18a   :  { %143 = vsyncadd [#allocation4], 4294967280 }
 0x18b   :  { %101 = sfence }
 0x18c   :  { %102 = vsyncpa [#allocation3], 1 }
 0x18d   :  { %103 = vsyncpa [#allocation4], 1 }

</bundles_post_ra>
